<compile_context>
chip_gen: v6e
topology: v6e:2x2x1
jax: 0.10.0
libtpu: 0.0.40
codegen_flags: <defaults>
</compile_context>

<pallas_src>
import functools
import math

import jax
import jax.numpy as jnp
from jax.experimental import pallas as pl
from jax.experimental.pallas import tpu as pltpu


def _pe_dropout_kernel(seed_ref, x_ref, pe_ref, o_ref, *,
                       dropout_p, training, row_stride):
    # x_ref / o_ref: (TILE_B, TILE_W)   pe_ref: (1, TILE_W)
    y = x_ref[...] + pe_ref[...]  # sublane broadcast of the shared PE row

    if training and dropout_p > 0.0:
        tb, tw = x_ref.shape
        # Global element index -> counter-based hash -> uniform 24-bit integer.
        r = jax.lax.broadcasted_iota(jnp.int32, (tb, tw), 0)
        c = jax.lax.broadcasted_iota(jnp.int32, (tb, tw), 1)
        g_row = pl.program_id(0) * tb + r
        g_col = pl.program_id(1) * tw + c
        ctr = (g_row * row_stride + g_col).astype(jnp.uint32)
        h = ctr + seed_ref[0].astype(jnp.uint32) * jnp.uint32(0x9E3779B9)
        # splitmix32-style mixing (plain VPU int ops, lowers on TPU + interpret)
        h = h ^ (h >> 16)
        h = h * jnp.uint32(0x7FEB352D)
        h = h ^ (h >> 15)
        h = h * jnp.uint32(0x846CA68B)
        h = h ^ (h >> 16)
        u24 = (h >> 8).astype(jnp.int32)                   # uniform in [0, 2^24)
        thr = jnp.int32(int(round(dropout_p * (1 << 24))))  # keep iff u24 >= thr
        keep = u24 >= thr
        scale = jnp.float32(1.0 / (1.0 - dropout_p))
        y = y * jnp.where(keep, scale, jnp.float32(0.0))

    o_ref[...] = y.astype(o_ref.dtype)


def make_pe_table(d_model: int, max_len: int = 5000) -> jnp.ndarray:
    """Sinusoidal table; matches the torch buffer pe[:, 0, :] -> (max_len, d_model)."""
    position = jnp.arange(max_len, dtype=jnp.float32)[:, None]
    div_term = jnp.exp(
        jnp.arange(0, d_model, 2, dtype=jnp.float32) * (-math.log(10000.0) / d_model)
    )
    pe = jnp.zeros((max_len, d_model), dtype=jnp.float32)
    pe = pe.at[:, 0::2].set(jnp.sin(position * div_term))
    pe = pe.at[:, 1::2].set(jnp.cos(position * div_term))
    return pe


def _choose_tiles(B, W, elem_bytes, target_bytes=2 << 20):
    """Pick (tile_b, tile_w) with tile_b | B and tile_w | W, ~target_bytes/block."""
    # Column (lane) tile: keep the full row unless it alone exceeds the budget
    # and a multiple-of-128 divisor exists.
    tile_w = W
    if W * elem_bytes > target_bytes and W % 128 == 0:
        cand = max(128, (target_bytes // elem_bytes) // 128 * 128)
        while cand > 128 and W % cand != 0:
            cand -= 128
        if W % cand == 0:
            tile_w = cand
    # Row (sublane) tile: must be a multiple of 8 or equal the full batch dim.
    rows_budget = max(1, target_bytes // (tile_w * elem_bytes))
    if rows_budget >= B:
        tile_b = B
    else:
        tile_b = min(B, max(8, (rows_budget // 8) * 8))
        while tile_b > 8 and B % tile_b != 0:
            tile_b -= 8
        if tile_b < 8 or B % tile_b != 0:
            tile_b = B  # fall back: one batch-spanning block
    return tile_b, tile_w


def positional_encoding_forward(
    x: jnp.ndarray,
    pe: jnp.ndarray,
    seed: int = 0,
    dropout_p: float = 0.1,
    training: bool = False,
) -> jnp.ndarray:
    """x: (batch, seq_len, d_model).  Returns same shape/dtype."""
    B, S, D = x.shape
    W = S * D
    x2 = x.reshape(B, W)                         # lane-dense layout
    pe2 = pe[:S].reshape(1, W).astype(x.dtype)   # shared PE row, same flatten order
    seed_arr = jnp.asarray([seed], dtype=jnp.int32)

    elem_bytes = jnp.dtype(x.dtype).itemsize
    tile_b, tile_w = _choose_tiles(B, W, elem_bytes)
    grid = (B // tile_b, W // tile_w)

    kernel = functools.partial(
        _pe_dropout_kernel,
        dropout_p=float(dropout_p),
        training=bool(training),
        row_stride=W,
    )

    out2 = pl.pallas_call(
        kernel,
        out_shape=jax.ShapeDtypeStruct((B, W), x.dtype),
        grid=grid,
        in_specs=[
            pl.BlockSpec(memory_space=pltpu.SMEM),                    # seed scalar
            pl.BlockSpec((tile_b, tile_w), lambda i, j: (i, j)),      # x rows
            pl.BlockSpec((1, tile_w), lambda i, j: (0, j)),           # shared pe row
        ],
        out_specs=pl.BlockSpec((tile_b, tile_w), lambda i, j: (i, j)),
        compiler_params=pltpu.CompilerParams(
            dimension_semantics=("parallel", "parallel"),  # megacore-shardable on v7x
        ),
    )(seed_arr, x2, pe2)

    return out2.reshape(B, S, D)


if __name__ == "__main__":
    d_model = 32
    batch, seq_len = 2, 8

    key = jax.random.PRNGKey(0)
    x = jax.random.normal(key, (batch, seq_len, d_model), dtype=jnp.float32)
    pe = make_pe_table(d_model, max_len=5000)

    # Eval mode (dropout = identity): must match the pure-JAX reference exactly.
    out_eval = positional_encoding_forward(x, pe, seed=0, dropout_p=0.1, training=False)
    out_eval = jax.block_until_ready(out_eval)
    ref = x + pe[:seq_len][None, :, :]
    assert out_eval.shape == x.shape and out_eval.dtype == x.dtype
    assert jnp.allclose(out_eval, ref, atol=1e-6, rtol=1e-6)

    # Training mode: every output element must be either 0 (dropped) or
    # ref * 1/(1-p) (kept) -- inverted-dropout semantics.
    p = 0.1
    out_train = positional_encoding_forward(x, pe, seed=123, dropout_p=p, training=True)
    out_train = jax.block_until_ready(out_train)
    assert out_train.shape == x.shape
    scale = 1.0 / (1.0 - p)
    dropped = jnp.isclose(out_train, 0.0, atol=1e-6)
    kept = jnp.isclose(out_train, ref * scale, atol=1e-5, rtol=1e-5)
    assert bool(jnp.all(dropped | kept))

    print("KERNEL_OK")
</pallas_src>

<mosaic_0001>
module attributes {stable_mosaic.version = 11 : i64} {
  func.func @_pe_dropout_kernel(%arg0: i32, %arg1: i32, %arg2: memref<1xi32, #tpu.memory_space<smem>>, %arg3: memref<2x256xf32, #tpu.memory_space<vmem>>, %arg4: memref<1x256xf32, #tpu.memory_space<vmem>>, %arg5: memref<2x256xf32, #tpu.memory_space<vmem>>) attributes {dimension_semantics = [#tpu.dimension_semantics<parallel>, #tpu.dimension_semantics<parallel>], iteration_bounds = array<i64: 1, 1>, scalar_prefetch = 0 : i64, scratch_operands = 0 : i64, tpu.core_type = #tpu.core_type<tc>, window_params = [{transform_indices = @transform_0, window_bounds = array<i64: 1>}, {transform_indices = @transform_1, window_bounds = array<i64: 2, 256>}, {transform_indices = @transform_2, window_bounds = array<i64: 1, 256>}, {transform_indices = @transform_3, window_bounds = array<i64: 2, 256>}]} {
    %c0 = arith.constant 0 : index
    %c0_0 = arith.constant 0 : index
    %0 = vector.load %arg3[%c0, %c0_0] : memref<2x256xf32, #tpu.memory_space<vmem>>, vector<2x256xf32>
    %c0_1 = arith.constant 0 : index
    %c0_2 = arith.constant 0 : index
    %1 = vector.load %arg4[%c0_1, %c0_2] : memref<1x256xf32, #tpu.memory_space<vmem>>, vector<1x256xf32>
    %2 = vector.broadcast %1 : vector<1x256xf32> to vector<2x256xf32>
    %3 = arith.addf %0, %2 : vector<2x256xf32>
    %c0_3 = arith.constant 0 : index
    %c0_4 = arith.constant 0 : index
    %4 = vector.load %arg5[%c0_3, %c0_4] : memref<2x256xf32, #tpu.memory_space<vmem>>, vector<2x256xf32>
    tpu.vector_store %arg5[%c0_3, %c0_4], %3 {strides = array<i32>} : memref<2x256xf32, #tpu.memory_space<vmem>>, vector<2x256xf32>,
    return
  }
  func.func @transform_0(%arg0: i32, %arg1: i32) -> i32 {
    %c0_i32 = arith.constant 0 : i32
    %c0_i32_0 = arith.constant 0 : i32
    return %c0_i32 : i32
  }
  func.func @transform_1(%arg0: i32, %arg1: i32) -> (i32, i32) {
    %c0_i32 = arith.constant 0 : i32
    return %arg0, %arg1 : i32, i32
  }
  func.func @transform_2(%arg0: i32, %arg1: i32) -> (i32, i32) {
    %c0_i32 = arith.constant 0 : i32
    %c0_i32_0 = arith.constant 0 : i32
    return %c0_i32, %arg1 : i32, i32
  }
  func.func @transform_3(%arg0: i32, %arg1: i32) -> (i32, i32) {
    %c0_i32 = arith.constant 0 : i32
    return %arg0, %arg1 : i32, i32
  }
}

</mosaic_0001>

<bundles_post_ra>
// kernel: tpu_custom_call.1
= control target key start
LH: loop header
LB: loop body
LE: loop exit
PB: predicated region body
PF: predicated region fallthrough
CT: control target
= control target key end

     0   :  { %9 = vsyncpa [#allocation4], 0  ;;  %s144_s0 = inlined_call_operand.<no memory space> [shape: s32[1], index: 0, kind: input, shape index: {}]   ;;  %s145_s1 = inlined_call_operand.hbm [shape: f32[2,256], index: 1, kind: input, shape index: {}]   ;;  %s146_s2 = inlined_call_operand.vmem [shape: f32[1,256], index: 2, kind: input, shape index: {}]   ;;  %s147_s3 = inlined_call_operand.hbm [shape: f32[2,256], index: 3, kind: output, shape index: {}]  }
   0x1   :  { %10 = vsyncpa [#allocation5], 0  ;;  %s112_s12 = smov [#allocation3]  }
   0x2   :  { %s19_s13 = sshll.u32 %s112_s12, 4  ;;  %s20_s13 = int_to_ptr.vmem [resolvable:$true] %s19_s13 }
   0x3   :  { %s76_s14 = scalar_lea.vmem %s20_s13, 64  ;;  %p81_p1 = scmp.lt.s32.totalorder %s20_s13, %s20_s13 }
   0x4   :  { %p77_p0 = scmp.ne.s32.totalorder %s20_s13, %s76_s14  ;;  %p82_p2 = scmp.lt.s32.totalorder %s76_s14, %s76_s14 }
   0x6   :  { %p83_p3 = por %p82_p2, %p81_p1 }
   0x8   :  { %p84_p4 = pnand %p83_p3, %p77_p0 }
   0xa   :  { %87 = shalt.err (!%p84_p4)
}
   0xb   :  { %22 = dma.hbm_to_vmem [thread:$0]  %s145_s1, 64, %s20_s13, [#allocation4]  }
   0xc   :  { %108 = dma.done.wait [#allocation4], 64  }
   0xd   :  { %109 = vsyncadd [#allocation4], 4294967232  ;;  %v31_v0 = vlaneseq  ;;  %v113_v1 = vmov 1983009808   ;;  %v29_v7 = vld [vmem:[%s146_s2] sm:$0x3] }
   0xe   :  { %v41_v2 = vunpack.c.l.s4 %v113_v1  ;;  %v28_v12 = vld [vmem:[#allocation3] sm:$0xf]  ;;  %s114_s18 = smov [#allocation6]  }
   0xf   :  { %v32_v3 = vshrl.u32 %v31_v0, 7  ;;  %s56_s1 = sshll.u32 %s114_s18, 4  ;;  %s57_s1 = int_to_ptr.vmem [resolvable:$true] %s56_s1 }
  0x10   :  { %v42_v6 = vunpack.c.0.s8 %v41_v2  ;;  %s88_s19 = scalar_lea.vmem %s57_s1, 64  ;;  %p93_p6 = scmp.lt.s32.totalorder %s57_s1, %s57_s1 }
  0x11   :  { %v33_v4 = vsub.s32 0, %v32_v3  ;;  %v37_v5 = vsub.s32 1, %v32_v3  ;;  %p89_p5 = scmp.ne.s32.totalorder %s57_s1, %s88_s19  ;;  %p94_p7 = scmp.lt.s32.totalorder %s88_s19, %s88_s19 }
  0x12   :  { %v45_v10 = vsub.s32 %v42_v6, %v32_v3 }
  0x13   :  { %v34_v8 = vrot.slane %v29_v7, %v33_v4  ;;  %v38_v9 = vrot.slane %v29_v7, %v37_v5  ;;  %p95_p8 = por %p94_p7, %p93_p6 }
  0x15   :  { %v39_v11 = vcombine.low %v34_v8, %v38_v9  ;;  %p96_p9 = pnand %p95_p8, %p89_p5 }
  0x17   :  { %v46_v13 = vrot.slane %v39_v11, %v45_v10 }
  0x19   :  { %v48_v14 = vadd.f32 %v46_v13, %v28_v12 }
  0x1b   :  { %49 = vst [vmem:[#allocation6] sm:$0xf] %v48_v14 }
  0x1c   :  { %99 = shalt.err (!%p96_p9)
}
  0x1d   :  { %59 = dma.vmem_to_hbm [thread:$0]  %s57_s1, 64, %s147_s3, [#allocation5]  }
  0x1e   :  { %110 = dma.done.wait [#allocation5], 64  }
  0x1f   :  { %111 = vsyncadd [#allocation5], 4294967232 }
  0x20   :  { %63 = vsyncpa [#allocation4], 1 }
  0x21   :  { %64 = vsyncpa [#allocation5], 1 }

</bundles_post_ra>
